<compile_context>
chip_gen: v7x
topology: tpu7x:2x2x1
jax: 0.10.0
libtpu: 0.0.40
codegen_flags: <defaults>
</compile_context>

<pallas_src>
import jax
import jax.numpy as jnp
from jax import lax
from jax.experimental import pallas as pl
from jax.experimental.pallas import tpu as pltpu


# ---------------------------------------------------------------------------
# helpers
# ---------------------------------------------------------------------------
def _ceil_to(x, m):
    return ((x + m - 1) // m) * m


def _pad2(x, rows, cols):
    r, c = x.shape
    if r == rows and c == cols:
        return x
    return jnp.pad(x, ((0, rows - r), (0, cols - c)))


# ---------------------------------------------------------------------------
# stage 0: image_embedder MLP + L2-normalize, tiled over B  (runs once, outside score loop)
# ---------------------------------------------------------------------------
def image_embed_kernel(img_ref, w1_ref, b1_ref, w2_ref, b2_ref, feats_n_ref):
    h = jnp.dot(img_ref[...], w1_ref[...],
                preferred_element_type=jnp.float32) + b1_ref[...]          # (TB, H) f32
    h = jnp.maximum(h, 0.0)
    feats = jnp.dot(h.astype(w2_ref.dtype), w2_ref[...],
                    preferred_element_type=jnp.float32) + b2_ref[...]      # (TB, E) f32
    sumsq = jnp.sum(feats * feats, axis=-1, keepdims=True)
    inv = lax.rsqrt(jnp.maximum(sumsq, 1e-24))                             # eps^2 clamp
    feats_n_ref[...] = (feats * inv).astype(feats_n_ref.dtype)


# ---------------------------------------------------------------------------
# stage 1: compose() = projection Linear + L2-normalize, produced TRANSPOSED (E, TP)
#          so stage 2 is a plain jnp.dot with no per-step relayout of the pair tile.
# ---------------------------------------------------------------------------
def pair_embed_T_kernel(pair_inT_ref, wpT_ref, bpT_ref, pair_nT_ref):
    # wpT: (E, 2E) const, pair_inT: (2E, TP), bpT: (E, 1) broadcast along lanes
    proj = jnp.dot(wpT_ref[...], pair_inT_ref[...],
                   preferred_element_type=jnp.float32) + bpT_ref[...]      # (E, TP) f32
    sumsq = jnp.sum(proj * proj, axis=0, keepdims=True)                    # (1, TP)
    inv = lax.rsqrt(jnp.maximum(sumsq, 1e-24))
    pair_nT_ref[...] = (proj * inv).astype(pair_nT_ref.dtype)


# ---------------------------------------------------------------------------
# stage 2: tiled cosine-score matmul  score = feats_n @ pair_nT
# ---------------------------------------------------------------------------
def score_kernel(feats_n_ref, pair_nT_ref, score_ref):
    score_ref[...] = jnp.dot(
        feats_n_ref[...], pair_nT_ref[...],
        preferred_element_type=jnp.float32).astype(score_ref.dtype)


# ---------------------------------------------------------------------------
# wrapper: padding, tiling, three pallas_calls
# ---------------------------------------------------------------------------
def compcos_score(img, w1, b1, w2, b2, pair_inputs, wp, bp,
                  *, compute_dtype=jnp.bfloat16, score_dtype=jnp.float32):
    B, F = img.shape
    H = w1.shape[1]
    E = w2.shape[1]
    P, twoE = pair_inputs.shape

    # pad contraction / lane dims to 128 (zero padding is numerically inert)
    F_pad = _ceil_to(F, 128)
    H_pad = _ceil_to(H, 128)
    E_pad = _ceil_to(E, 128)
    TE = _ceil_to(twoE, 128)

    # batch tile: 256 matches the v6e/v7x MXU height; small eval batches round to the
    # bf16 sublane pack (16) / f32 (8).
    if B >= 256:
        TB = 256
    elif B >= 128:
        TB = 128
    else:
        sub = 16 if jnp.dtype(compute_dtype).itemsize == 2 else 8
        TB = _ceil_to(B, sub)
    B_pad = _ceil_to(B, TB)

    # pair tile: big tiles -> fewer grid steps, long lane-dense stores, larger DMAs
    if P >= 8192:
        TP = 2048
    elif P >= 1024:
        TP = 1024
    else:
        TP = _ceil_to(P, 128)
    P_pad = _ceil_to(P, TP)

    img_p = _pad2(img, B_pad, F_pad).astype(compute_dtype)
    w1_p = _pad2(w1, F_pad, H_pad).astype(compute_dtype)
    b1_p = _pad2(b1, 1, H_pad).astype(jnp.float32)
    w2_p = _pad2(w2, H_pad, E_pad).astype(compute_dtype)
    b2_p = _pad2(b2, 1, E_pad).astype(jnp.float32)

    # pair path pre-transposed in glue (one cheap XLA transpose, once per pair table)
    pair_inT_p = _pad2(pair_inputs.T, TE, P_pad).astype(compute_dtype)     # (2E, P) padded
    wpT_p = _pad2(wp.T, E_pad, TE).astype(compute_dtype)                   # (E, 2E) padded
    bpT_p = _pad2(bp.T, E_pad, 1).astype(jnp.float32)                      # (E, 1) padded

    # --- stage 0: normalized image embeddings (once, outside the score loop) ---
    feats_n = pl.pallas_call(
        image_embed_kernel,
        out_shape=jax.ShapeDtypeStruct((B_pad, E_pad), compute_dtype),
        grid=(B_pad // TB,),
        in_specs=[
            pl.BlockSpec((TB, F_pad), lambda i: (i, 0)),
            pl.BlockSpec((F_pad, H_pad), lambda i: (0, 0)),
            pl.BlockSpec((1, H_pad), lambda i: (0, 0)),
            pl.BlockSpec((H_pad, E_pad), lambda i: (0, 0)),
            pl.BlockSpec((1, E_pad), lambda i: (0, 0)),
        ],
        out_specs=pl.BlockSpec((TB, E_pad), lambda i: (i, 0)),
        compiler_params=pltpu.CompilerParams(
            dimension_semantics=("parallel",)),
    )(img_p, w1_p, b1_p, w2_p, b2_p)

    # --- stage 1: normalized pair embeddings, transposed (E_pad, P_pad) ---
    pair_nT = pl.pallas_call(
        pair_embed_T_kernel,
        out_shape=jax.ShapeDtypeStruct((E_pad, P_pad), compute_dtype),
        grid=(P_pad // TP,),
        in_specs=[
            pl.BlockSpec((TE, TP), lambda p: (0, p)),
            pl.BlockSpec((E_pad, TE), lambda p: (0, 0)),
            pl.BlockSpec((E_pad, 1), lambda p: (0, 0)),
        ],
        out_specs=pl.BlockSpec((E_pad, TP), lambda p: (0, p)),
        compiler_params=pltpu.CompilerParams(
            dimension_semantics=("parallel",)),
    )(pair_inT_p, wpT_p, bpT_p)

    # --- stage 2: tiled cosine-score matmul.  P outer (pair tile streams from HBM once,
    #     reused across all B tiles); both axes independent -> fully parallel (v7x megacore
    #     splits P tiles across both TensorCores even for a single B tile). ---
    score = pl.pallas_call(
        score_kernel,
        out_shape=jax.ShapeDtypeStruct((B_pad, P_pad), score_dtype),
        grid=(P_pad // TP, B_pad // TB),
        in_specs=[
            pl.BlockSpec((TB, E_pad), lambda j, i: (i, 0)),
            pl.BlockSpec((E_pad, TP), lambda j, i: (0, j)),
        ],
        out_specs=pl.BlockSpec((TB, TP), lambda j, i: (i, j)),
        compiler_params=pltpu.CompilerParams(
            dimension_semantics=("parallel", "parallel"),
            vmem_limit_bytes=48 * 1024 * 1024),
    )(feats_n, pair_nT)

    return score[:B, :P]


# ---------------------------------------------------------------------------
# deterministic "CompCos" parameterisation + glue (embedding gathers etc.)
# ---------------------------------------------------------------------------
def init_params(key, feat_dim, hidden, emb_dim, n_attrs, n_objs):
    ks = jax.random.split(key, 7)
    scale = 0.05
    return {
        # image_embedder MLP: Linear(feat_dim, hidden) + ReLU + Linear(hidden, emb_dim)
        "w1": scale * jax.random.normal(ks[0], (feat_dim, hidden), jnp.float32),
        "b1": scale * jax.random.normal(ks[1], (1, hidden), jnp.float32),
        "w2": scale * jax.random.normal(ks[2], (hidden, emb_dim), jnp.float32),
        "b2": scale * jax.random.normal(ks[3], (1, emb_dim), jnp.float32),
        # attr/obj embedding tables (nn.Embedding)
        "attr_emb": jax.random.normal(ks[4], (n_attrs, emb_dim), jnp.float32),
        "obj_emb": jax.random.normal(ks[5], (n_objs, emb_dim), jnp.float32),
        # projection: Linear(2*emb_dim, emb_dim)
        "wp": scale * jax.random.normal(ks[6], (2 * emb_dim, emb_dim), jnp.float32),
        "bp": jnp.zeros((1, emb_dim), jnp.float32),
    }


def compcos_forward_eval(img, params, val_attrs, val_objs,
                         *, compute_dtype=jnp.bfloat16, score_dtype=jnp.float32):
    """Equivalent of CompCos.val_forward (eval-mode forward)."""
    # glue: embedding lookups + concat (compose() input)
    attr_vecs = params["attr_emb"][val_attrs]                     # (P, E)
    obj_vecs = params["obj_emb"][val_objs]                        # (P, E)
    pair_inputs = jnp.concatenate([attr_vecs, obj_vecs], axis=1)  # (P, 2E)
    return compcos_score(img, params["w1"], params["b1"],
                         params["w2"], params["b2"],
                         pair_inputs, params["wp"], params["bp"],
                         compute_dtype=compute_dtype, score_dtype=score_dtype)


def compcos_reference(img, params, val_attrs, val_objs):
    """Pure-JAX fp32 reference matching the PyTorch semantics (highest matmul precision)."""
    pH = lax.Precision.HIGHEST
    h = jnp.maximum(jnp.dot(img, params["w1"], precision=pH) + params["b1"], 0.0)
    feats = jnp.dot(h, params["w2"], precision=pH) + params["b2"]
    feats_n = feats / jnp.maximum(
        jnp.linalg.norm(feats, axis=1, keepdims=True), 1e-12)
    attr_vecs = params["attr_emb"][val_attrs]
    obj_vecs = params["obj_emb"][val_objs]
    pair = jnp.dot(jnp.concatenate([attr_vecs, obj_vecs], axis=1),
                   params["wp"], precision=pH) + params["bp"]
    pair_n = pair / jnp.maximum(
        jnp.linalg.norm(pair, axis=1, keepdims=True), 1e-12)
    return jnp.dot(feats_n, pair_n.T, precision=pH)


if __name__ == "__main__":
    # small synthetic dataset config
    B = 8            # batch
    FEAT_DIM = 32    # dset.feat_dim
    HIDDEN = 32      # fc_emb hidden layer
    EMB_DIM = 32     # args.emb_dim
    N_ATTRS = 6
    N_OBJS = 5
    N_PAIRS = 16     # len(dset.pairs)

    key = jax.random.PRNGKey(0)
    k_img, k_par, k_a, k_o = jax.random.split(key, 4)

    params = init_params(k_par, FEAT_DIM, HIDDEN, EMB_DIM, N_ATTRS, N_OBJS)

    # deterministic (attr, obj) index lists for the candidate pairs
    val_attrs = jax.random.randint(k_a, (N_PAIRS,), 0, N_ATTRS)
    val_objs = jax.random.randint(k_o, (N_PAIRS,), 0, N_OBJS)

    img = jax.random.normal(k_img, (B, FEAT_DIM), jnp.float32)

    ref = jax.block_until_ready(compcos_reference(img, params, val_attrs, val_objs))

    # structural / accuracy check with fp32 operands
    score_f32 = jax.block_until_ready(
        compcos_forward_eval(img, params, val_attrs, val_objs,
                             compute_dtype=jnp.float32, score_dtype=jnp.float32))
    assert score_f32.shape == (B, N_PAIRS)
    assert jnp.allclose(score_f32, ref, atol=2e-3, rtol=2e-3), "fp32 mismatch vs reference"

    # fast path: bf16 MXU operands, fp32 accumulation & normalization, fp32 scores
    score = jax.block_until_ready(
        compcos_forward_eval(img, params, val_attrs, val_objs,
                             compute_dtype=jnp.bfloat16, score_dtype=jnp.float32))
    assert score.shape == (B, N_PAIRS)
    assert jnp.allclose(score, ref, atol=5e-2, rtol=5e-2), "bf16 mismatch vs reference"

    # fastest path: bf16 score writeback (halves the dominant B x P store traffic);
    # cosine scores in [-1, 1] survive bf16 for top-k / argmax metrics.
    score_bf16 = jax.block_until_ready(
        compcos_forward_eval(img, params, val_attrs, val_objs,
                             compute_dtype=jnp.bfloat16, score_dtype=jnp.bfloat16))
    assert score_bf16.shape == (B, N_PAIRS)
    assert jnp.allclose(score_bf16.astype(jnp.float32), ref, atol=6e-2, rtol=6e-2), \
        "bf16-score mismatch vs reference"

    # glue: the `scores` dict of val_forward (per-pair columns)
    pairs = [(int(a), int(o)) for a, o in zip(val_attrs, val_objs)]
    scores_dict = {pair: score[:, i] for i, pair in enumerate(pairs)}

    # TODO(synk): training-mode cross-entropy loss (train_forward_closed/open) and the
    # open-world feasibility bookkeeping are host-side / label-dependent glue and are
    # not part of the fused kernels.
    print("KERNEL_OK")
</pallas_src>

<mosaic_0001>
module attributes {stable_mosaic.version = 11 : i64} {
  func.func @image_embed_kernel(%arg0: i32, %arg1: memref<8x128xf32, #tpu.memory_space<vmem>>, %arg2: memref<128x128xf32, #tpu.memory_space<vmem>>, %arg3: memref<1x128xf32, #tpu.memory_space<vmem>>, %arg4: memref<128x128xf32, #tpu.memory_space<vmem>>, %arg5: memref<1x128xf32, #tpu.memory_space<vmem>>, %arg6: memref<8x128xf32, #tpu.memory_space<vmem>>) attributes {dimension_semantics = [#tpu.dimension_semantics<parallel>], iteration_bounds = array<i64: 1>, scalar_prefetch = 0 : i64, scratch_operands = 0 : i64, tpu.core_type = #tpu.core_type<tc>, window_params = [{transform_indices = @transform_0, window_bounds = array<i64: 8, 128>}, {pipeline_mode = #tpu.pipeline_mode<synchronous>, transform_indices = @transform_1, window_bounds = array<i64: 128, 128>}, {pipeline_mode = #tpu.pipeline_mode<synchronous>, transform_indices = @transform_2, window_bounds = array<i64: 1, 128>}, {pipeline_mode = #tpu.pipeline_mode<synchronous>, transform_indices = @transform_3, window_bounds = array<i64: 128, 128>}, {pipeline_mode = #tpu.pipeline_mode<synchronous>, transform_indices = @transform_4, window_bounds = array<i64: 1, 128>}, {transform_indices = @transform_5, window_bounds = array<i64: 8, 128>}]} {
    %c0 = arith.constant 0 : index
    %c0_0 = arith.constant 0 : index
    %0 = vector.load %arg1[%c0, %c0_0] : memref<8x128xf32, #tpu.memory_space<vmem>>, vector<8x128xf32>
    %c0_1 = arith.constant 0 : index
    %c0_2 = arith.constant 0 : index
    %1 = vector.load %arg2[%c0_1, %c0_2] : memref<128x128xf32, #tpu.memory_space<vmem>>, vector<128x128xf32>
    %cst = arith.constant dense<0.000000e+00> : vector<8x128xf32>
    %2 = tpu.matmul %0, %1, %cst {dimension_numbers = #tpu.dot_dimension_numbers<[1], [0], [0], [1], [0, 0, 1, 1], [], []>} : vector<8x128xf32>, vector<128x128xf32>, vector<8x128xf32> -> vector<8x128xf32>
    %c0_3 = arith.constant 0 : index
    %c0_4 = arith.constant 0 : index
    %3 = vector.load %arg3[%c0_3, %c0_4] : memref<1x128xf32, #tpu.memory_space<vmem>>, vector<1x128xf32>
    %4 = vector.broadcast %3 : vector<1x128xf32> to vector<8x128xf32>
    %5 = arith.addf %2, %4 : vector<8x128xf32>
    %cst_5 = arith.constant 0.000000e+00 : f32
    %6 = vector.broadcast %cst_5 : f32 to vector<8x128xf32>
    %7 = arith.maximumf %5, %6 : vector<8x128xf32>
    %c0_6 = arith.constant 0 : index
    %c0_7 = arith.constant 0 : index
    %8 = vector.load %arg4[%c0_6, %c0_7] : memref<128x128xf32, #tpu.memory_space<vmem>>, vector<128x128xf32>
    %cst_8 = arith.constant dense<0.000000e+00> : vector<8x128xf32>
    %9 = tpu.matmul %7, %8, %cst_8 {dimension_numbers = #tpu.dot_dimension_numbers<[1], [0], [0], [1], [0, 0, 1, 1], [], []>} : vector<8x128xf32>, vector<128x128xf32>, vector<8x128xf32> -> vector<8x128xf32>
    %c0_9 = arith.constant 0 : index
    %c0_10 = arith.constant 0 : index
    %10 = vector.load %arg5[%c0_9, %c0_10] : memref<1x128xf32, #tpu.memory_space<vmem>>, vector<1x128xf32>
    %11 = vector.broadcast %10 : vector<1x128xf32> to vector<8x128xf32>
    %12 = arith.addf %9, %11 : vector<8x128xf32>
    %13 = arith.mulf %12, %12 : vector<8x128xf32>
    %cst_11 = arith.constant dense<0.000000e+00> : vector<8xf32>
    %14 = vector.multi_reduction <add>, %13, %cst_11 [1] : vector<8x128xf32> to vector<8xf32>
    %15 = vector.shape_cast %14 : vector<8xf32> to vector<8x1xf32>
    %cst_12 = arith.constant 1.000000e-24 : f32
    %16 = vector.broadcast %cst_12 : f32 to vector<8x1xf32>
    %17 = arith.maximumf %15, %16 : vector<8x1xf32>
    %18 = math.rsqrt %17 : vector<8x1xf32>
    %19 = vector.broadcast %18 : vector<8x1xf32> to vector<8x128xf32>
    %20 = arith.mulf %12, %19 : vector<8x128xf32>
    %c0_13 = arith.constant 0 : index
    %c0_14 = arith.constant 0 : index
    %21 = vector.load %arg6[%c0_13, %c0_14] : memref<8x128xf32, #tpu.memory_space<vmem>>, vector<8x128xf32>
    tpu.vector_store %arg6[%c0_13, %c0_14], %20 {strides = array<i32>} : memref<8x128xf32, #tpu.memory_space<vmem>>, vector<8x128xf32>,
    return
  }
  func.func @transform_0(%arg0: i32) -> (i32, i32) {
    %c0_i32 = arith.constant 0 : i32
    %c0_i32_0 = arith.constant 0 : i32
    return %arg0, %c0_i32 : i32, i32
  }
  func.func @transform_1(%arg0: i32) -> (i32, i32) {
    %c0_i32 = arith.constant 0 : i32
    %c0_i32_0 = arith.constant 0 : i32
    %c0_i32_1 = arith.constant 0 : i32
    return %c0_i32, %c0_i32_0 : i32, i32
  }
  func.func @transform_2(%arg0: i32) -> (i32, i32) {
    %c0_i32 = arith.constant 0 : i32
    %c0_i32_0 = arith.constant 0 : i32
    %c0_i32_1 = arith.constant 0 : i32
    return %c0_i32, %c0_i32_0 : i32, i32
  }
  func.func @transform_3(%arg0: i32) -> (i32, i32) {
    %c0_i32 = arith.constant 0 : i32
    %c0_i32_0 = arith.constant 0 : i32
    %c0_i32_1 = arith.constant 0 : i32
    return %c0_i32, %c0_i32_0 : i32, i32
  }
  func.func @transform_4(%arg0: i32) -> (i32, i32) {
    %c0_i32 = arith.constant 0 : i32
    %c0_i32_0 = arith.constant 0 : i32
    %c0_i32_1 = arith.constant 0 : i32
    return %c0_i32, %c0_i32_0 : i32, i32
  }
  func.func @transform_5(%arg0: i32) -> (i32, i32) {
    %c0_i32 = arith.constant 0 : i32
    %c0_i32_0 = arith.constant 0 : i32
    return %arg0, %c0_i32 : i32, i32
  }
}

</mosaic_0001>

<bundles_post_ra>
// kernel: tpu_custom_call.1
= control target key start
LH: loop header
LB: loop body
LE: loop exit
PB: predicated region body
PF: predicated region fallthrough
CT: control target
= control target key end

     0   :  { %10 = vsyncpa [#allocation3], 0  ;;  %s645_s0 = inlined_call_operand.hbm [shape: f32[8,128], index: 0, kind: input, shape index: {}]   ;;  %s646_s1 = inlined_call_operand.hbm [shape: f32[128,128], index: 1, kind: input, shape index: {}]   ;;  %s647_s2 = inlined_call_operand.vmem [shape: f32[1,128], index: 2, kind: input, shape index: {}]   ;;  %s648_s3 = inlined_call_operand.hbm [shape: f32[128,128], index: 3, kind: input, shape index: {}]   ;;  %s649_s4 = inlined_call_operand.vmem [shape: f32[1,128], index: 4, kind: input, shape index: {}]   ;;  %s650_s5 = inlined_call_operand.hbm [shape: f32[8,128], index: 5, kind: output, shape index: {}]  }
   0x1   :  { %11 = vsyncpa [#allocation6], 0 }
   0x2   :  { %12 = vsyncpa [#allocation4], 0  ;;  %s530_s18 = smov [#allocation5]   ;;  %s436_s22 = scalar_lea.hbm %s646_s1, 2048 }
   0x3   :  { %s28_s19 = sshll.u32 %s530_s18, 4  ;;  %p437_p0 = scmp.ne.s32.totalorder %s646_s1, %s436_s22  ;;  %s29_s19 = int_to_ptr.vmem [resolvable:$true] %s28_s19 }
   0x4   :  { %p440_p1 = scmp.lt.u32.totalorder %s436_s22, %s646_s1 }
   0x6   :  { %p442_p2 = pnand %p440_p1, %p437_p0 }
   0x8   :  { %445 = shalt.err (!%p442_p2)
}
   0x9   :  { %s446_s27 = scalar_lea.vmem %s29_s19, 2048  ;;  %p451_p4 = scmp.lt.s32.totalorder %s29_s19, %s29_s19 }
   0xa   :  { %p447_p3 = scmp.ne.s32.totalorder %s29_s19, %s446_s27  ;;  %p452_p5 = scmp.lt.s32.totalorder %s446_s27, %s446_s27 }
   0xc   :  { %p453_p6 = por %p452_p5, %p451_p4 }
   0xe   :  { %p454_p7 = pnand %p453_p6, %p447_p3 }
  0x10   :  { %457 = shalt.err (!%p454_p7)
}
  0x11   :  { %s531_s28 = smov 128   ;;  %s532_s29 = smov 8  }
  0x12   :  { %34 = dma.hbm_to_vmem [thread:$0]  %s646_s1, 2048, %s29_s19, [#allocation6], %s531_s28, %s531_s28, %s532_s29  }
  0x13   :  { %s533_s7 = smov [#allocation2]   ;;  %s534_s9 = smov [#allocation7]  }
  0x14   :  { %s19_s8 = sshll.u32 %s533_s7, 4  ;;  %s42_s10 = sshll.u32 %s534_s9, 4  ;;  %s20_s8 = int_to_ptr.vmem [resolvable:$true] %s19_s8  ;;  %s43_s10 = int_to_ptr.vmem [resolvable:$true] %s42_s10 }
  0x15   :  { %s458_s13 = scalar_lea.hbm %s645_s0, 128 }
  0x16   :  { %p459_p8 = scmp.ne.s32.totalorder %s645_s0, %s458_s13  ;;  %p462_p9 = scmp.lt.u32.totalorder %s458_s13, %s645_s0 }
  0x18   :  { %p464_p10 = pnand %p462_p9, %p459_p8 }
  0x1a   :  { %467 = shalt.err (!%p464_p10)
}
  0x1b   :  { %s468_s1 = scalar_lea.vmem %s20_s8, 128  ;;  %p473_p12 = scmp.lt.s32.totalorder %s20_s8, %s20_s8 }
  0x1c   :  { %p469_p11 = scmp.ne.s32.totalorder %s20_s8, %s468_s1  ;;  %p474_p13 = scmp.lt.s32.totalorder %s468_s1, %s468_s1 }
  0x1e   :  { %p475_p0 = por %p474_p13, %p473_p12 }
  0x20   :  { %p476_p1 = pnand %p475_p0, %p469_p11 }
  0x22   :  { %479 = shalt.err (!%p476_p1)
}
  0x23   :  { %22 = dma.hbm_to_vmem [thread:$0]  %s645_s0, 128, %s20_s8, [#allocation3]  }
  0x24   :  { %s480_s22 = scalar_lea.hbm %s648_s3, 2048 }
  0x25   :  { %p481_p2 = scmp.ne.s32.totalorder %s648_s3, %s480_s22  ;;  %p484_p3 = scmp.lt.u32.totalorder %s480_s22, %s648_s3 }
  0x27   :  { %p486_p4 = pnand %p484_p3, %p481_p2 }
  0x29   :  { %489 = shalt.err (!%p486_p4)
}
  0x2a   :  { %s490_s27 = scalar_lea.vmem %s43_s10, 2048  ;;  %p495_p6 = scmp.lt.s32.totalorder %s43_s10, %s43_s10 }
  0x2b   :  { %p491_p5 = scmp.ne.s32.totalorder %s43_s10, %s490_s27  ;;  %p496_p7 = scmp.lt.s32.totalorder %s490_s27, %s490_s27 }
  0x2d   :  { %p497_p8 = por %p496_p7, %p495_p6 }
  0x2f   :  { %p498_p9 = pnand %p497_p8, %p491_p5 }
  0x31   :  { %501 = shalt.err (!%p498_p9)
}
  0x32   :  { %48 = dma.hbm_to_vmem [thread:$0]  %s648_s3, 2048, %s43_s10, [#allocation6], %s531_s28, %s531_s28, %s532_s29  }
  0x33   :  { %524 = dma.done.wait [#allocation3], 128  }
  0x34   :  { %525 = vsyncadd [#allocation3], 4294967168 }
  0x35   :  { %526 = dma.done.wait [#allocation6], 4096  }
  0x36   :  { %527 = vsyncadd [#allocation6], 4294963200  ;;  %v535_v0 = vmov 0.0|0.0   ;;  %vm536_vm0 = vmmov 0   ;;  %v537_v1 = vmov 0.0   ;;  %v61_v2 = vld [vmem:[#allocation5] sm:$0xff] }
  0x37   :  { %377 = vmatprep.subr.bf16.mxu0 %v535_v0  ;;  %339 = vmatprep.mubr.msk.f32.mxu0 %vm536_vm0, %v537_v1  ;;  %v62_v3 = vld [vmem:[#allocation5 + $0x8] sm:$0xff]  ;;  %v63_v4 = vld [vmem:[#allocation5 + $0x10] sm:$0xff]  ;;  %v64_v6 = vld [vmem:[#allocation5 + $0x18] sm:$0xff]  ;;  %s538_s7 = smov [#allocation8]  }
  0x38   :  { %401 = vmatprep.subr.bf16.mxu1 %v535_v0  ;;  %374 = vmatprep.mubr.msk.f32.mxu1 %vm536_vm0, %v537_v1  ;;  %v378_v5 = vpack.c.bf16 %v62_v3, %v61_v2  ;;  %v381_v7 = vpack.c.bf16 %v64_v6, %v63_v4  ;;  %v65_v8 = vld [vmem:[#allocation5 + $0x20] sm:$0xff]  ;;  %v66_v9 = vld [vmem:[#allocation5 + $0x28] sm:$0xff]  ;;  %v157_v12 = vld [vmem:[#allocation7 + $0x10] sm:$0xff]  ;;  %s261_s8 = sshll.u32 %s538_s7, 4  ;;  %s262_s8 = int_to_ptr.vmem [resolvable:$true] %s261_s8 }
  0x39   :  { %v155_v10 = vld [vmem:[#allocation7] sm:$0xff]  ;;  %v156_v11 = vld [vmem:[#allocation7 + $0x8] sm:$0xff]  ;;  %v158_v13 = vld [vmem:[#allocation7 + $0x18] sm:$0xff]  ;;  %v384_v14 = vpack.c.bf16 %v66_v9, %v65_v8  ;;  %p507_p11 = scmp.lt.s32.totalorder %s262_s8, %s262_s8 }
  0x3a   :  { %379 = vmatpush3.bf16.msra.mxu0 %v378_v5  ;;  %v402_v15 = vpack.c.bf16 %v156_v11, %v155_v10  ;;  %v67_v16 = vld [vmem:[#allocation5 + $0x30] sm:$0xff]  ;;  %v68_v17 = vld [vmem:[#allocation5 + $0x38] sm:$0xff]  ;;  %v405_v18 = vpack.c.bf16 %v158_v13, %v157_v12  ;;  %v159_v19 = vld [vmem:[#allocation7 + $0x20] sm:$0xff] }
  0x3b   :  { %380 = vmatprep.subr.bf16.mxu0 %v535_v0  ;;  %v160_v20 = vld [vmem:[#allocation7 + $0x28] sm:$0xff]  ;;  %v387_v21 = vpack.c.bf16 %v68_v17, %v67_v16  ;;  %v69_v22 = vld [vmem:[#allocation5 + $0x40] sm:$0xff]  ;;  %v161_v25 = vld [vmem:[#allocation7 + $0x30] sm:$0xff] }
  0x3c   :  { %403 = vmatpush3.bf16.msra.mxu1 %v402_v15  ;;  %v70_v23 = vld [vmem:[#allocation5 + $0x48] sm:$0xff]  ;;  %v408_v24 = vpack.c.bf16 %v160_v20, %v159_v19  ;;  %v162_v26 = vld [vmem:[#allocation7 + $0x38] sm:$0xff]  ;;  %v71_v28 = vld [vmem:[#allocation5 + $0x50] sm:$0xff] }
  0x3d   :  { %404 = vmatprep.subr.bf16.mxu1 %v535_v0  ;;  %v390_v27 = vpack.c.bf16 %v70_v23, %v69_v22  ;;  %v72_v29 = vld [vmem:[#allocation5 + $0x58] sm:$0xff]  ;;  %v411_v30 = vpack.c.bf16 %v162_v26, %v161_v25  ;;  %v163_v31 = vld [vmem:[#allocation7 + $0x40] sm:$0xff]  ;;  %v164_v32 = vld [vmem:[#allocation7 + $0x48] sm:$0xff] }
  0x3e   :  { %382 = vmatpush3.bf16.msra.mxu0 %v381_v7  ;;  %v393_v33 = vpack.c.bf16 %v72_v29, %v71_v28  ;;  %v73_v34 = vld [vmem:[#allocation5 + $0x60] sm:$0xff]  ;;  %v74_v35 = vld [vmem:[#allocation5 + $0x68] sm:$0xff]  ;;  %v414_v36 = vpack.c.bf16 %v164_v32, %v163_v31  ;;  %v165_v37 = vld [vmem:[#allocation7 + $0x50] sm:$0xff] }
  0x3f   :  { %383 = vmatprep.subr.bf16.mxu0 %v535_v0  ;;  %v166_v38 = vld [vmem:[#allocation7 + $0x58] sm:$0xff]  ;;  %v396_v39 = vpack.c.bf16 %v74_v35, %v73_v34  ;;  %v75_v40 = vld [vmem:[#allocation5 + $0x70] sm:$0xff]  ;;  %v167_v43 = vld [vmem:[#allocation7 + $0x60] sm:$0xff] }
  0x40   :  { %406 = vmatpush3.bf16.msra.mxu1 %v405_v18  ;;  %v76_v41 = vld [vmem:[#allocation5 + $0x78] sm:$0xff]  ;;  %v417_v42 = vpack.c.bf16 %v166_v38, %v165_v37  ;;  %v168_v44 = vld [vmem:[#allocation7 + $0x68] sm:$0xff]  ;;  %v169_v48 = vld [vmem:[#allocation7 + $0x70] sm:$0xff] }
  0x41   :  { %407 = vmatprep.subr.bf16.mxu1 %v535_v0  ;;  %v399_v45 = vpack.c.bf16 %v76_v41, %v75_v40  ;;  %v420_v46 = vpack.c.bf16 %v168_v44, %v167_v43  ;;  %v60_v47 = vld [vmem:[#allocation2] sm:$0xff] }
  0x42   :  { %385 = vmatpush3.bf16.msra.mxu0 %v384_v14  ;;  %v170_v49 = vld [vmem:[#allocation7 + $0x78] sm:$0xff] }
  0x43   :  { %386 = vmatprep.subr.bf16.mxu0 %v535_v0  ;;  %v423_v50 = vpack.c.bf16 %v170_v49, %v169_v48  ;;  %v271_v51 = vld [vmem:[%s647_s2] ss:$0 sm:$0xff]  ;;  %s502_s2 = scalar_lea.vmem %s262_s8, 128 }
  0x44   :  { %409 = vmatpush3.bf16.msra.mxu1 %v408_v24  ;;  %v272_v56 = vld [vmem:[%s649_s4] ss:$0 sm:$0xff]  ;;  %p503_p10 = scmp.ne.s32.totalorder %s262_s8, %s502_s2  ;;  %p508_p12 = scmp.lt.s32.totalorder %s502_s2, %s502_s2 }
  0x45   :  { %410 = vmatprep.subr.bf16.mxu1 %v535_v0 }
  0x46   :  { %388 = vmatpush3.bf16.msra.mxu0 %v387_v21  ;;  %p509_p13 = por %p508_p12, %p507_p11 }
  0x47   :  { %389 = vmatprep.subr.bf16.mxu0 %v535_v0 }
  0x48   :  { %412 = vmatpush3.bf16.msra.mxu1 %v411_v30  ;;  %p510_p0 = pnand %p509_p13, %p503_p10 }
  0x49   :  { %413 = vmatprep.subr.bf16.mxu1 %v535_v0 }
  0x4a   :  { %391 = vmatpush3.bf16.msra.mxu0 %v390_v27 }
  0x4b   :  { %392 = vmatprep.subr.bf16.mxu0 %v535_v0 }
  0x4c   :  { %415 = vmatpush3.bf16.msra.mxu1 %v414_v36 }
  0x4d   :  { %416 = vmatprep.subr.bf16.mxu1 %v535_v0 }
  0x4e   :  { %394 = vmatpush3.bf16.msra.mxu0 %v393_v33 }
  0x4f   :  { %395 = vmatprep.subr.bf16.mxu0 %v535_v0 }
  0x50   :  { %418 = vmatpush3.bf16.msra.mxu1 %v417_v42 }
  0x51   :  { %419 = vmatprep.subr.bf16.mxu1 %v535_v0 }
  0x52   :  { %397 = vmatpush3.bf16.msra.mxu0 %v396_v39 }
  0x53   :  { %398 = vmatprep.subr.bf16.mxu0 %v535_v0 }
  0x54   :  { %421 = vmatpush3.bf16.msra.mxu1 %v420_v46 }
  0x55   :  { %422 = vmatprep.subr.bf16.mxu1 %v535_v0 }
  0x56   :  { %400 = vmatpush3.bf16.msra.mxu0 %v399_v45 }
  0x58   :  { %424 = vmatpush3.bf16.msra.mxu1 %v423_v50 }
  0x59   :  { %340 = vmatmul.mubr.f32.vlgmr.msra.gmra.mrb[0].mxu0 %v60_v47 }
 0x12c   :  { %v150_v52 = vpop.f32.mrb[0].mxu0 }
 0x12d   :  { %v151_v53 = vadd.f32 %v271_v51, %v150_v52  ;;  %v341_v54 = vpop.f32.mrb[1].mxu0 }
 0x12f   :  { %v154_v55 = vmax.f32 %v151_v53, 0.0 }
 0x131   :  { %375 = vmatmul.mubr.f32.vlgmr.msra.gmra.mrb[0].mxu1 %v154_v55 }
 0x204   :  { %v244_v57 = vpop.f32.mrb[0].mxu1 }
 0x205   :  { %v245_v58 = vadd.f32 %v272_v56, %v244_v57  ;;  %v376_v59 = vpop.f32.mrb[1].mxu1 }
 0x207   :  { %v248_v60 = vmul.f32 %v245_v58, %v245_v58 }
 0x209   :  { %249 = vadd.xlane.f32.xlu0 %v248_v60 }
 0x296   :  { %v250_v61 = vpop.xlane.xlu0 %249 }
 0x297   :  { %v251_v62 = vmax.f32 %v250_v61, 1e-24 }
 0x299   :  { %434 = vrsqrt.f32 %v251_v62 }
 0x2a3   :  { %v435_v63 = vpop.eup %434 }
 0x2a4   :  { %v253_v0 = vmul.f32 %v435_v63, %v245_v58 }
 0x2a6   :  { %254 = vst [vmem:[#allocation8] sm:$0xff] %v253_v0 }
 0x2a7   :  { %513 = shalt.err (!%p510_p0)
}
 0x2a8   :  { %s514_s10 = scalar_lea.hbm %s650_s5, 128 }
 0x2a9   :  { %p515_p1 = scmp.ne.s32.totalorder %s650_s5, %s514_s10  ;;  %p518_p2 = scmp.lt.u32.totalorder %s514_s10, %s650_s5 }
 0x2ab   :  { %p520_p3 = pnand %p518_p2, %p515_p1 }
 0x2ad   :  { %523 = shalt.err (!%p520_p3)
}
 0x2ae   :  { %264 = dma.vmem_to_hbm [thread:$0]  %s262_s8, 128, %s650_s5, [#allocation4]  }
 0x2af   :  { %528 = dma.done.wait [#allocation4], 128  }
 0x2b0   :  { %529 = vsyncadd [#allocation4], 4294967168 }
 0x2b1   :  { %268 = vsyncpa [#allocation3], 1 }
 0x2b2   :  { %269 = vsyncpa [#allocation6], 1 }
 0x2b3   :  { %270 = vsyncpa [#allocation4], 1 }

</bundles_post_ra>
